<compile_context>
chip_gen: v6e
topology: v6e:2x2x1
jax: 0.10.0
libtpu: 0.0.40
codegen_flags: <defaults>
</compile_context>

<pallas_src>
import jax
import jax.numpy as jnp
from jax.experimental import pallas as pl
from jax.experimental.pallas import tpu as pltpu

C_IN = 768      # fixed by the module: nn.Linear(768, dim)
_LANE = 128     # TPU lane width
_SUBLANE = 8    # TPU sublane width


def _round_up(x, m):
    return ((x + m - 1) // m) * m


def _adapter_kernel(x_ref, wd_ref, wu_ref, o_ref):
    x = x_ref[...]
    if x.dtype != wd_ref.dtype:
        # Keep both MXU operands in the weight dtype (single-pass bf16 MXU
        # instead of the multi-pass mixed/fp32 path).
        x = x.astype(wd_ref.dtype)
    # Down projection: (tm, 768) @ (768, dim_p) -> (tm, dim_p), f32 accumulate.
    down = jnp.dot(x, wd_ref[...], preferred_element_type=jnp.float32)
    # act = nn.Identity() -> no-op;  Dropout(0.1) in eval mode -> identity.
    # TODO(synk): training-mode stochastic dropout (torch RNG) is not reproduced.
    if wu_ref.dtype != jnp.float32:
        down = down.astype(wu_ref.dtype)
    # Up projection: (tm, dim_p) @ (dim_p, 768) -> (tm, 768), f32 accumulate.
    up = jnp.dot(down, wu_ref[...], preferred_element_type=jnp.float32)
    o_ref[...] = up.astype(o_ref.dtype)


def prepare_adapter_weights(w_down, w_up, dtype=jnp.float32):
    """One-time weight prep (module init time, not per forward call).

    w_down: (dim, 768) torch layout -> W_down^T zero-padded to (768, dim_p)
    w_up:   (768, dim) torch layout -> W_up^T   zero-padded to (dim_p, 768)
    Zero padding of the hidden axis is exact: padded W_down columns produce
    zero activations which hit zero W_up rows.  Pass dtype=jnp.bfloat16 to
    halve weight traffic and enable the fast bf16 MXU path (small precision
    deviation from the fp32 PyTorch reference).
    """
    dim = w_down.shape[0]
    assert w_down.shape == (dim, C_IN) and w_up.shape == (C_IN, dim)
    dim_p = max(_LANE, _round_up(dim, _LANE))
    wd_t = jnp.zeros((C_IN, dim_p), dtype).at[:, :dim].set(w_down.T.astype(dtype))
    wu_t = jnp.zeros((dim_p, C_IN), dtype).at[:dim, :].set(w_up.T.astype(dtype))
    return wd_t, wu_t


def _default_tile_m(x_itemsize):
    """Largest row tile whose double-buffered in+out tiles fit the default
    scoped-VMEM budget of the current TPU generation (headroom left for the
    resident weights, f32 intermediates and Mosaic internal scratch)."""
    try:
        kind = jax.devices()[0].device_kind.lower()
    except Exception:
        kind = ""
    big_vmem = any(t in kind for t in ("v6", "v7", "7x"))   # 32 MiB default scope
    budget = (24 << 20) if big_vmem else (12 << 20)         # v5e: 16 MiB default
    per_row = 2 * 2 * C_IN * x_itemsize                     # in + out, double-buffered
    tm = (budget // per_row) // _SUBLANE * _SUBLANE
    return int(max(_SUBLANE, min(tm, 2048)))


def _pick_grid(rows, tile_m):
    """Row tile + step count.  Prefer an even step count (>= 2; >= 4 when there
    is enough work) so v7x's two TensorCores share the ("parallel",) axis
    evenly and every core keeps >= 2 steps for DMA/compute overlap."""
    rows8 = _round_up(rows, _SUBLANE)
    tm = min(_round_up(tile_m, _SUBLANE), rows8)
    steps = pl.cdiv(rows, tm)
    if rows8 >= 4 * _SUBLANE:
        min_steps = 4
    elif rows8 >= 2 * _SUBLANE:
        min_steps = 2
    else:
        min_steps = 1
    target = max(steps, min_steps)
    if target > 1 and target % 2:
        target += 1
    if target != steps:
        tm = min(tm, _round_up(pl.cdiv(rows8, target), _SUBLANE))
        steps = pl.cdiv(rows, tm)
    return int(tm), int(steps)


def _build_adapter_call(rows, tm, steps, dim_p, out_dtype, x_dtype, w_dtype):
    x_bytes = jnp.dtype(x_dtype).itemsize
    o_bytes = jnp.dtype(out_dtype).itemsize
    w_bytes = jnp.dtype(w_dtype).itemsize
    cost = pl.CostEstimate(
        flops=4 * rows * C_IN * dim_p,                      # two matmuls
        transcendentals=0,
        bytes_accessed=rows * C_IN * (x_bytes + o_bytes)    # x in + out
        + 2 * C_IN * dim_p * w_bytes,                       # both weights
    )
    return pl.pallas_call(
        _adapter_kernel,
        out_shape=jax.ShapeDtypeStruct((rows, C_IN), out_dtype),
        grid_spec=pltpu.PrefetchScalarGridSpec(
            num_scalar_prefetch=0,
            grid=(steps,),
            in_specs=[
                pl.BlockSpec((tm, C_IN), lambda i: (i, 0)),        # x row tile
                pl.BlockSpec((C_IN, dim_p), lambda i: (0, 0)),     # W_down^T (resident)
                pl.BlockSpec((dim_p, C_IN), lambda i: (0, 0)),     # W_up^T   (resident)
            ],
            out_specs=pl.BlockSpec((tm, C_IN), lambda i: (i, 0)),
        ),
        compiler_params=pltpu.CompilerParams(
            dimension_semantics=("parallel",)),    # megacore-shard the row axis
        cost_estimate=cost,
    )


def adapter_forward(x, wd_t, wu_t, *, tile_m=None, out_dtype=None):
    """x: (B, N, 768);  wd_t/wu_t: outputs of prepare_adapter_weights()."""
    B, N, C = x.shape
    assert C == C_IN
    dim_p = wd_t.shape[1]
    rows = B * N
    out_dtype = x.dtype if out_dtype is None else out_dtype
    if tile_m is None:
        tile_m = _default_tile_m(jnp.dtype(x.dtype).itemsize)
    tm, steps = _pick_grid(rows, tile_m)

    # No padding copy of x: a partial last block reads garbage rows that only
    # feed out-of-bounds output rows, whose writes Pallas drops.
    x2d = x.reshape(rows, C)
    out2d = _build_adapter_call(rows, tm, steps, dim_p, out_dtype,
                                x.dtype, wd_t.dtype)(x2d, wd_t, wu_t)
    return out2d.reshape(B, N, C)


if __name__ == "__main__":
    key = jax.random.PRNGKey(0)
    k_x, k_wd, k_wu, k_x2 = jax.random.split(key, 4)

    B, N, dim = 2, 8, 64   # small demo shapes; C is fixed at 768 by the module

    # Parameter init mirroring the module's __init__:
    #   adapter_down: nn.Linear default (kaiming-uniform-like) -> uniform here
    #   adapter_up:   nn.init.zeros_
    bound = 1.0 / (C_IN ** 0.5)
    w_down = jax.random.uniform(k_wd, (dim, C_IN), jnp.float32, -bound, bound)
    w_up_zero = jnp.zeros((C_IN, dim), jnp.float32)

    # --- fp32 path, zero-init W_up (the module's init state): exact zeros out.
    x = jax.random.normal(k_x, (B, N, C_IN), dtype=jnp.float32)
    wd_t, wu_t = prepare_adapter_weights(w_down, w_up_zero)
    out = jax.block_until_ready(adapter_forward(x, wd_t, wu_t))
    assert out.shape == (B, N, C_IN)
    assert jnp.allclose(out, 0.0)

    # --- fp32, non-zero W_up, ragged row count (exercises the masked tail block).
    w_up = jax.random.uniform(k_wu, (C_IN, dim), jnp.float32, -bound, bound)
    wd_t, wu_t = prepare_adapter_weights(w_down, w_up)
    x2 = jax.random.normal(k_x2, (3, 7, C_IN), dtype=jnp.float32)
    out2 = jax.block_until_ready(adapter_forward(x2, wd_t, wu_t))
    ref2 = (x2.reshape(-1, C_IN) @ w_down.T @ w_up.T).reshape(3, 7, C_IN)
    assert jnp.allclose(out2, ref2, atol=1e-2, rtol=1e-2)

    # --- bf16 fast path (recommended in production: ~2x on a bandwidth-bound op).
    wd_b, wu_b = prepare_adapter_weights(w_down, w_up, dtype=jnp.bfloat16)
    x_b = x2.astype(jnp.bfloat16)
    out_b = jax.block_until_ready(adapter_forward(x_b, wd_b, wu_b))
    assert out_b.dtype == jnp.bfloat16
    assert jnp.allclose(out_b.astype(jnp.float32), ref2, atol=5e-2, rtol=5e-2)

    print("KERNEL_OK")
</pallas_src>

<mosaic_0001>
module attributes {stable_mosaic.version = 11 : i64} {
  func.func @_adapter_kernel(%arg0: i32, %arg1: memref<8x768xf32, #tpu.memory_space<vmem>>, %arg2: memref<768x128xf32, #tpu.memory_space<vmem>>, %arg3: memref<128x768xf32, #tpu.memory_space<vmem>>, %arg4: memref<8x768xf32, #tpu.memory_space<vmem>>) attributes {dimension_semantics = [#tpu.dimension_semantics<parallel>], iteration_bounds = array<i64: 2>, scalar_prefetch = 0 : i64, scratch_operands = 0 : i64, tpu.core_type = #tpu.core_type<tc>, window_params = [{transform_indices = @transform_0, window_bounds = array<i64: 8, 768>}, {pipeline_mode = #tpu.pipeline_mode<synchronous>, transform_indices = @transform_1, window_bounds = array<i64: 768, 128>}, {pipeline_mode = #tpu.pipeline_mode<synchronous>, transform_indices = @transform_2, window_bounds = array<i64: 128, 768>}, {transform_indices = @transform_3, window_bounds = array<i64: 8, 768>}]} {
    %c0 = arith.constant 0 : index
    %c0_0 = arith.constant 0 : index
    %0 = vector.load %arg1[%c0, %c0_0] : memref<8x768xf32, #tpu.memory_space<vmem>>, vector<8x768xf32>
    %c0_1 = arith.constant 0 : index
    %c0_2 = arith.constant 0 : index
    %1 = vector.load %arg2[%c0_1, %c0_2] : memref<768x128xf32, #tpu.memory_space<vmem>>, vector<768x128xf32>
    %cst = arith.constant dense<0.000000e+00> : vector<8x128xf32>
    %2 = tpu.matmul %0, %1, %cst {dimension_numbers = #tpu.dot_dimension_numbers<[1], [0], [0], [1], [0, 0, 1, 1], [], []>} : vector<8x768xf32>, vector<768x128xf32>, vector<8x128xf32> -> vector<8x128xf32>
    %c0_3 = arith.constant 0 : index
    %c0_4 = arith.constant 0 : index
    %3 = vector.load %arg3[%c0_3, %c0_4] : memref<128x768xf32, #tpu.memory_space<vmem>>, vector<128x768xf32>
    %cst_5 = arith.constant dense<0.000000e+00> : vector<8x768xf32>
    %4 = tpu.matmul %2, %3, %cst_5 {dimension_numbers = #tpu.dot_dimension_numbers<[1], [0], [0], [1], [0, 0, 1, 1], [], []>} : vector<8x128xf32>, vector<128x768xf32>, vector<8x768xf32> -> vector<8x768xf32>
    %c0_6 = arith.constant 0 : index
    %c0_7 = arith.constant 0 : index
    %5 = vector.load %arg4[%c0_6, %c0_7] : memref<8x768xf32, #tpu.memory_space<vmem>>, vector<8x768xf32>
    tpu.vector_store %arg4[%c0_6, %c0_7], %4 {strides = array<i32>} : memref<8x768xf32, #tpu.memory_space<vmem>>, vector<8x768xf32>,
    return
  }
  func.func @transform_0(%arg0: i32) -> (i32, i32) {
    %c0_i32 = arith.constant 0 : i32
    %c0_i32_0 = arith.constant 0 : i32
    return %arg0, %c0_i32 : i32, i32
  }
  func.func @transform_1(%arg0: i32) -> (i32, i32) {
    %c0_i32 = arith.constant 0 : i32
    %c0_i32_0 = arith.constant 0 : i32
    %c0_i32_1 = arith.constant 0 : i32
    return %c0_i32, %c0_i32_0 : i32, i32
  }
  func.func @transform_2(%arg0: i32) -> (i32, i32) {
    %c0_i32 = arith.constant 0 : i32
    %c0_i32_0 = arith.constant 0 : i32
    %c0_i32_1 = arith.constant 0 : i32
    return %c0_i32, %c0_i32_0 : i32, i32
  }
  func.func @transform_3(%arg0: i32) -> (i32, i32) {
    %c0_i32 = arith.constant 0 : i32
    %c0_i32_0 = arith.constant 0 : i32
    return %arg0, %c0_i32 : i32, i32
  }
}

</mosaic_0001>

<bundles_post_ra>
// kernel: tpu_custom_call.1
= control target key start
LH: loop header
LB: loop body
LE: loop exit
PB: predicated region body
PF: predicated region fallthrough
CT: control target
= control target key end

     0   :  { %8 = vsyncpa [#allocation3], 0  ;;  %s1507_s0 = inlined_call_operand.hbm [shape: f32[16,768], index: 0, kind: input, shape index: {}]   ;;  %s1508_s1 = inlined_call_operand.hbm [shape: f32[768,128], index: 1, kind: input, shape index: {}]   ;;  %s1509_s2 = inlined_call_operand.hbm [shape: f32[128,768], index: 2, kind: input, shape index: {}]   ;;  %s1510_s3 = inlined_call_operand.hbm [shape: f32[16,768], index: 3, kind: output, shape index: {}]  }
   0x1   :  { %10 = vsyncpa [#allocation3 + $0x1], 0 }
   0x2   :  { %11 = vsyncpa [#allocation6], 0 }
   0x3   :  { %12 = vsyncpa [#allocation4], 0 }
   0x4   :  { %14 = vsyncpa [#allocation4 + $0x1], 0  ;;  %s1319_s12 = smov 0   ;;  %s1321_s13 = smov 0  }
   0x5   :  { %s1323_s14 = smov 0   ;;  %s1325_s15 = smov 0  }
   0x6 LB: > { %s1340_s16 = sadd.s32 4294967295, %s1288_s15   ;;  %s947_s17 = sadd.s32 4294967294, %s1288_s15   ;;  %s1288_s15 = sphi %s1325_s15, %s1532_s15   ;;  %s1284_s14 = sphi %s1323_s14, %s1531_s14   ;;  %s1280_s13 = sphi %s1321_s13, %s1530_s13   ;;  %s1276_s12 = sphi %s1319_s12, %s1529_s12  }
   0x7   : > { %p40_p0 = scmp.ne.s32.totalorder %s1280_s13, %s1276_s12  ;;  %p1511_p1 = scmp.eq.s32.totalorder %s1340_s16, 0 }
   0x8   : > { %p112_p3 = scmp.eq.s32.totalorder %s947_s17, 1  ;;  %p948_p5 = scmp.ge.s32.totalorder %s1288_s15, 1 }
   0x9   : > { %p1349_p4 = por %p1511_p1, %p40_p0  ;;  %p119_p7 = scmp.lt.s32.totalorder %s1288_s15, 3 }
   0xa   : > { %p1354_p6 = por %p112_p3, %p40_p0  ;;  %s1290_s21 = smov [#allocation5]  }
   0xb   : > { %s1515_s18 = scalar_select %p1349_p4, 1, 0 }
   0xc   : > { %s1516_s19 = scalar_select %p1354_p6, 1, 0 }
   0xd   : > { %p1359_p8 = pnand %p948_p5, %p119_p7  ;;  %s131_s22 = sshll.u32 %s1290_s21, 4  ;;  %s132_s22 = int_to_ptr.vmem [resolvable:$true] %s131_s22 }
   0xe   : > { %s1291_s24 = smov [#allocation7]   ;;  %s1151_s26 = scalar_lea.vmem %s132_s22, 12288 }
   0xf   : > { %s1517_s20 = scalar_select %p1359_p8, 1, 0 }
  0x10   : > { %p1080_p9 = pneg %p1359_p8  ;;  %s144_s25 = sshll.u32 %s1291_s24, 4  ;;  %s145_s25 = int_to_ptr.vmem [resolvable:$true] %s144_s25 }
  0x11   : > { %p1152_p13 = scmp.ne.s32.totalorder %s132_s22, %s1151_s26  ;;  %p1159_p5 = scmp.lt.s32.totalorder %s132_s22, %s132_s22 }
  0x12   : > { %p1368_p11 = pnand %p1080_p9, %p1511_p1  ;;  %p1160_p7 = scmp.lt.s32.totalorder %s1151_s26, %s1151_s26 }
  0x14   : > { %p1142_p12 = pneg %p1368_p11  ;;  %p1161_p10 = por %p1160_p7, %p1159_p5 }
  0x16   : > { %p1154_p0 = pnand %p1152_p13, %p1142_p12 }
  0x18   : > { %p1155_p3 = pneg %p1154_p0 }
  0x1a   : > { %p1162_p9 = pnand %p1161_p10, %p1155_p3 }
  0x1c   : > { %1165 = shalt.err (!%p1162_p9)
}
  0x1d   : > { %s1292_s27 = smov 128   ;;  %s1293_s28 = smov 8  }
  0x1e   : > { %1083 = dma.hbm_to_vmem [thread:$0]  (!%p1368_p11), %s1508_s1, 12288, %s132_s22, [#allocation6], %s1292_s27, %s1292_s27, %s1293_s28  }
  0x1f   : > { %s1177_s4 = scalar_lea.vmem %s145_s25, 12288  ;;  %p1185_p2 = scmp.lt.s32.totalorder %s145_s25, %s145_s25 }
  0x20   : > { %p1178_p1 = scmp.ne.s32.totalorder %s145_s25, %s1177_s4  ;;  %p1186_p6 = scmp.lt.s32.totalorder %s1177_s4, %s1177_s4 }
  0x22   : > { %p1180_p13 = pnand %p1178_p1, %p1142_p12  ;;  %p1187_p5 = por %p1186_p6, %p1185_p2 }
  0x24   : > { %p1181_p0 = pneg %p1180_p13 }
  0x26   : > { %p1188_p10 = pnand %p1187_p5, %p1181_p0 }
  0x28   : > { %1191 = shalt.err (!%p1188_p10)
}
  0x29   : > { %s1294_s5 = smov 768   ;;  %s1295_s6 = smov 48  }
  0x2a   : > { %1086 = dma.hbm_to_vmem [thread:$0]  (!%p1368_p11), %s1509_s2, 12288, %s145_s25, [#allocation6], %s1294_s5, %s1294_s5, %s1295_s6  }
  0x2b   : > { %s1391_s9 = sadd.s32 1, %s1288_s15   ;;  %s27_s11 = sadd.s32 1, %s1284_s14 }
  0x2c   : > { %s24_s10 = ssub.s32 %s1288_s15, %s1391_s9  ;;  %p34_p2 = scmp.ne.s32.totalorder %s1284_s14, %s1280_s13 }
  0x2d   : > { %p25_p1 = scmp.eq.s32.totalorder %s24_s10, 0  ;;  %p35_p6 = scmp.eq.s32.totalorder %s1288_s15, 0 }
  0x2e   : > { %p1519_p3 = scmp.eq.s32.totalorder %s1340_s16, 1  ;;  %p1097_p9 = scmp.lt.s32.totalorder %s1288_s15, 2 }
  0x2f   : > { %s1400_s17 = scalar_select %p25_p1, %s1284_s14, %s27_s11  }
  0x30   : > { %p36_p12 = por %p35_p6, %p34_p2  ;;  %p1404_p7 = por %p1519_p3, %p34_p2 }
  0x31   : > { %s158_s22 = sand.u32 1, %s1284_s14   ;;  %s1065_s24 = smul.u32 768, %s1288_s15 }
  0x32   : > { %s1520_s21 = scalar_select %p1404_p7, 1, 0 }
  0x33   : > { %s1064_s23 = smul.u32 48, %s158_s22  ;;  %p1411_p11 = pnand %p1097_p9, %p36_p12 }
  0x34   : > { %s1418_s28 = scalar_lea.hbm %s1507_s0, %s1065_s24  ;;  %s159_s4 = scalar_lea.sflag [#allocation3], %s158_s22 }
  0x35   : > { %s162_s29 = scalar_lea.vmem [#allocation2], %s1064_s23  ;;  %s1192_s5 = scalar_lea.hbm %s1418_s28, 768 }
  0x36   : > { %s170_s30 = sshll.u32 %s162_s29, 4  ;;  %p1193_p13 = scmp.ne.s32.totalorder %s1418_s28, %s1192_s5  ;;  %s171_s30 = int_to_ptr.vmem [resolvable:$true] %s170_s30 }
  0x37   : > { %p1194_p0 = pneg %p1411_p11  ;;  %s1197_s8 = scalar_lea.hbm %s1507_s0, 1536 }
  0x38   : > { %p1198_p1 = scmp.lt.s32.totalorder %s1418_s28, %s1507_s0  ;;  %p1199_p2 = scmp.lt.s32.totalorder %s1197_s8, %s1192_s5 }
  0x39   : > { %p1195_p5 = pnand %p1194_p0, %p1193_p13 }
  0x3a   : > { %p1200_p6 = por %p1199_p2, %p1198_p1 }
  0x3b   : > { %p1196_p10 = pneg %p1195_p5 }
  0x3d   : > { %p1201_p12 = pnand %p1200_p6, %p1196_p10 }
  0x3f   : > { %1204 = shalt.err (!%p1201_p12)
}
  0x40   : > { %s1205_s23 = scalar_lea.vmem %s171_s30, 768  ;;  %s1296_s22 = smov [#allocation2]  }
  0x41   : > { %p1206_p3 = scmp.ne.s32.totalorder %s171_s30, %s1205_s23  ;;  %s1210_s24 = sshll.u32 %s1296_s22, 4  ;;  %s1211_s24 = int_to_ptr.vmem [resolvable:$false] %s1210_s24 }
  0x42   : > { %s1212_s26 = scalar_lea.vmem %s1211_s24, 1536  ;;  %p1213_p13 = scmp.lt.s32.totalorder %s171_s30, %s1211_s24 }
  0x43   : > { %p1208_p9 = pnand %p1206_p3, %p1194_p0  ;;  %p1214_p5 = scmp.lt.s32.totalorder %s1212_s26, %s1205_s23 }
  0x45   : > { %p1209_p7 = pneg %p1208_p9  ;;  %p1215_p4 = por %p1214_p5, %p1213_p13 }
  0x47   : > { %p1216_p8 = pnand %p1215_p4, %p1209_p7 }
  0x49   : > { %1219 = shalt.err (!%p1216_p8)
}
  0x4a   : > { %1090 = dma.hbm_to_vmem [thread:$0]  (!%p1411_p11), %s1418_s28, 768, %s171_s30, %s159_s4  }
  0x4b   : > { %p1522_p10 = scmp.ne.s32.totalorder %s1517_s20, 0 }
  0x4c   : > { %s1437_s27 = sand.u32 (!%p1522_p10), 1, %s1280_s13   ;;  %p1523_p4 = scmp.ne.s32.totalorder (!%p1522_p10), %s1515_s18, 0 }
  0x4d   : > { %179 = sbr.rel (%p1522_p10) target bundleno = 593 (0x251), region = 32  ;;  %s182_s5 = scalar_lea.sflag (!%p1522_p10), [#allocation3], %s1437_s27 }
  0x4e   : > { %s1066_s29 = smul.u32 (!%p1522_p10), 48, %s1437_s27 }
  0x50   : > { %s1443_s6 = scalar_lea.vmem (!%p1522_p10), [#allocation2], %s1066_s29 }
  0x52   : > { %1263 = dma.done.wait (%p1523_p4), %s182_s5, 768  }
  0x53   : > { %1265 = vsyncadd (%p1523_p4), %s182_s5, 4294966528  ;;  %p1524_p8 = scmp.eq.s32.totalorder %s1340_s16, 0 }
  0x55   : > { %1267 = dma.done.wait (%p1524_p8), [#allocation6], 24576   ;;  %p1525_p7 = pmov %p1524_p8 }
  0x56   : > { %v253_v0 = vld [vmem:[#allocation5 + $0xf8] sm:$0xff]  ;;  %v252_v4 = vld [vmem:[#allocation5 + $0xf0] sm:$0xff]  ;;  %v251_v8 = vld [vmem:[#allocation5 + $0xe8] sm:$0xff]  ;;  %s215_s18 = scalar_lea.vmem [#allocation8], %s1066_s29  ;;  %s1067_s20 = smul.u32 768, %s1340_s16 }
  0x57   : > { %1269 = vsyncadd (%p1525_p7), [#allocation6], 4294942720  ;;  %v285_v1 = vld [vmem:[#allocation5 + $0x1f8] sm:$0xff]  ;;  %959 = vmatprep.subr.mxu0 %v253_v0  ;;  %v284_v5 = vld [vmem:[#allocation5 + $0x1f0] sm:$0xff]  ;;  %s858_s25 = sshll.u32 %s215_s18, 4  ;;  %s844_s7 = scalar_lea.sflag [#allocation4], %s1437_s27  ;;  %s859_s25 = int_to_ptr.vmem [resolvable:$true] %s858_s25 }
  0x58   : > { %v237_v2 = vld [vmem:[#allocation5 + $0x78] sm:$0xff]  ;;  %994 = vmatprep.subr.mxu1 %v285_v1  ;;  %v236_v6 = vld [vmem:[#allocation5 + $0x70] sm:$0xff]  ;;  %v283_v9 = vld [vmem:[#allocation5 + $0x1e8] sm:$0xff]  ;;  %s1470_s4 = scalar_lea.hbm %s1510_s3, %s1067_s20  ;;  %s1220_s8 = scalar_lea.vmem %s859_s25, 768 }
  0x59   : > { %v269_v3 = vld [vmem:[#allocation5 + $0x178] sm:$0xff]  ;;  %960 = vmatpush3.msra.mxu0 %v237_v2  ;;  %v268_v7 = vld [vmem:[#allocation5 + $0x170] sm:$0xff]  ;;  %v235_v10 = vld [vmem:[#allocation5 + $0x68] sm:$0xff]  ;;  %p1221_p11 = scmp.ne.s32.totalorder %s859_s25, %s1220_s8  ;;  %p1526_p0 = scmp.ne.s32.totalorder %s1520_s21, 0 }
  0x5a   : > { %995 = vmatpush3.msra.mxu1 %v269_v3  ;;  %961 = vmatprep.subr.mxu0 %v252_v4  ;;  %v267_v11 = vld [vmem:[#allocation5 + $0x168] sm:$0xff]  ;;  %v250_v12 = vld [vmem:[#allocation5 + $0xe0] sm:$0xff]  ;;  %v249_v16 = vld [vmem:[#allocation5 + $0xd8] sm:$0xff]  ;;  %s1298_s10 = smov [#allocation8]  }
  0x5b   : > { %996 = vmatprep.subr.mxu1 %v284_v5  ;;  %962 = vmatpush3.msra.mxu0 %v236_v6  ;;  %v282_v13 = vld [vmem:[#allocation5 + $0x1e0] sm:$0xff]  ;;  %v281_v17 = vld [vmem:[#allocation5 + $0x1d8] sm:$0xff]  ;;  %v248_v20 = vld [vmem:[#allocation5 + $0xd0] sm:$0xff]  ;;  %p1222_p1 = pnand %p1221_p11, %p1526_p0  ;;  %s1224_s11 = sshll.u32 %s1298_s10, 4  ;;  %s1225_s11 = int_to_ptr.vmem [resolvable:$false] %s1224_s11 }
  0x5c   : > { %997 = vmatpush3.msra.mxu1 %v268_v7  ;;  %963 = vmatprep.subr.mxu0 %v251_v8  ;;  %v234_v14 = vld [vmem:[#allocation5 + $0x60] sm:$0xff]  ;;  %v233_v18 = vld [vmem:[#allocation5 + $0x58] sm:$0xff]  ;;  %v280_v21 = vld [vmem:[#allocation5 + $0x1d0] sm:$0xff]  ;;  %s1226_s16 = scalar_lea.vmem %s1225_s11, 1536  ;;  %p1227_p6 = scmp.lt.s32.totalorder %s859_s25, %s1225_s11 }
  0x5d   : > { %998 = vmatprep.subr.mxu1 %v283_v9  ;;  %v266_v15 = vld [vmem:[#allocation5 + $0x160] sm:$0xff]  ;;  %964 = vmatpush3.msra.mxu0 %v235_v10  ;;  %v265_v19 = vld [vmem:[#allocation5 + $0x158] sm:$0xff]  ;;  %v232_v22 = vld [vmem:[#allocation5 + $0x50] sm:$0xff]  ;;  %p1223_p2 = pneg %p1222_p1  ;;  %p1228_p12 = scmp.lt.s32.totalorder %s1226_s16, %s1220_s8 }
  0x5e   : > { %999 = vmatpush3.msra.mxu1 %v267_v11  ;;  %965 = vmatprep.subr.mxu0 %v250_v12  ;;  %v264_v23 = vld [vmem:[#allocation5 + $0x150] sm:$0xff]  ;;  %v247_v24 = vld [vmem:[#allocation5 + $0xc8] sm:$0xff]  ;;  %v246_v28 = vld [vmem:[#allocation5 + $0xc0] sm:$0xff] }
  0x5f   : > { %1000 = vmatprep.subr.mxu1 %v282_v13  ;;  %966 = vmatpush3.msra.mxu0 %v234_v14  ;;  %v279_v25 = vld [vmem:[#allocation5 + $0x1c8] sm:$0xff]  ;;  %v278_v29 = vld [vmem:[#allocation5 + $0x1c0] sm:$0xff]  ;;  %v245_v32 = vld [vmem:[#allocation5 + $0xb8] sm:$0xff]  ;;  %p1229_p3 = por %p1228_p12, %p1227_p6 }
  0x60   : > { %1001 = vmatpush3.msra.mxu1 %v266_v15  ;;  %967 = vmatprep.subr.mxu0 %v249_v16  ;;  %v231_v26 = vld [vmem:[#allocation5 + $0x48] sm:$0xff]  ;;  %v230_v30 = vld [vmem:[#allocation5 + $0x40] sm:$0xff]  ;;  %v277_v33 = vld [vmem:[#allocation5 + $0x1b8] sm:$0xff] }
  0x61   : > { %1002 = vmatprep.subr.mxu1 %v281_v17  ;;  %968 = vmatpush3.msra.mxu0 %v233_v18  ;;  %v263_v27 = vld [vmem:[#allocation5 + $0x148] sm:$0xff]  ;;  %v262_v31 = vld [vmem:[#allocation5 + $0x140] sm:$0xff]  ;;  %v229_v34 = vld [vmem:[#allocation5 + $0x38] sm:$0xff]  ;;  %p1230_p9 = pnand %p1229_p3, %p1223_p2 }
  0x62   : > { %1003 = vmatpush3.msra.mxu1 %v265_v19  ;;  %969 = vmatprep.subr.mxu0 %v248_v20  ;;  %v261_v35 = vld [vmem:[#allocation5 + $0x138] sm:$0xff]  ;;  %v244_v36 = vld [vmem:[#allocation5 + $0xb0] sm:$0xff]  ;;  %v243_v40 = vld [vmem:[#allocation5 + $0xa8] sm:$0xff] }
  0x63   : > { %1004 = vmatprep.subr.mxu1 %v280_v21  ;;  %970 = vmatpush3.msra.mxu0 %v232_v22  ;;  %v276_v37 = vld [vmem:[#allocation5 + $0x1b0] sm:$0xff]  ;;  %v275_v41 = vld [vmem:[#allocation5 + $0x1a8] sm:$0xff]  ;;  %v242_v44 = vld [vmem:[#allocation5 + $0xa0] sm:$0xff] }
  0x64   : > { %1005 = vmatpush3.msra.mxu1 %v264_v23  ;;  %971 = vmatprep.subr.mxu0 %v247_v24  ;;  %v228_v38 = vld [vmem:[#allocation5 + $0x30] sm:$0xff]  ;;  %v227_v42 = vld [vmem:[#allocation5 + $0x28] sm:$0xff]  ;;  %v274_v45 = vld [vmem:[#allocation5 + $0x1a0] sm:$0xff] }
  0x65   : > { %1006 = vmatprep.subr.mxu1 %v279_v25  ;;  %972 = vmatpush3.msra.mxu0 %v231_v26  ;;  %v260_v39 = vld [vmem:[#allocation5 + $0x130] sm:$0xff]  ;;  %v259_v43 = vld [vmem:[#allocation5 + $0x128] sm:$0xff]  ;;  %v226_v46 = vld [vmem:[#allocation5 + $0x20] sm:$0xff] }
  0x66   : > { %1007 = vmatpush3.msra.mxu1 %v263_v27  ;;  %973 = vmatprep.subr.mxu0 %v246_v28  ;;  %v258_v47 = vld [vmem:[#allocation5 + $0x120] sm:$0xff]  ;;  %v241_v48 = vld [vmem:[#allocation5 + $0x98] sm:$0xff]  ;;  %v240_v52 = vld [vmem:[#allocation5 + $0x90] sm:$0xff] }
  0x67   : > { %1008 = vmatprep.subr.mxu1 %v278_v29  ;;  %974 = vmatpush3.msra.mxu0 %v230_v30  ;;  %v273_v49 = vld [vmem:[#allocation5 + $0x198] sm:$0xff]  ;;  %v272_v53 = vld [vmem:[#allocation5 + $0x190] sm:$0xff]  ;;  %v239_v56 = vld [vmem:[#allocation5 + $0x88] sm:$0xff] }
  0x68   : > { %1009 = vmatpush3.msra.mxu1 %v262_v31  ;;  %975 = vmatprep.subr.mxu0 %v245_v32  ;;  %v225_v50 = vld [vmem:[#allocation5 + $0x18] sm:$0xff]  ;;  %v224_v54 = vld [vmem:[#allocation5 + $0x10] sm:$0xff]  ;;  %v271_v57 = vld [vmem:[#allocation5 + $0x188] sm:$0xff] }
  0x69   : > { %1010 = vmatprep.subr.mxu1 %v277_v33  ;;  %976 = vmatpush3.msra.mxu0 %v229_v34  ;;  %v257_v51 = vld [vmem:[#allocation5 + $0x118] sm:$0xff]  ;;  %v256_v55 = vld [vmem:[#allocation5 + $0x110] sm:$0xff]  ;;  %v223_v58 = vld [vmem:[#allocation5 + $0x8] sm:$0xff] }
  0x6a   : > { %1011 = vmatpush3.msra.mxu1 %v261_v35  ;;  %977 = vmatprep.subr.mxu0 %v244_v36  ;;  %v255_v59 = vld [vmem:[#allocation5 + $0x108] sm:$0xff]  ;;  %v238_v60 = vld [vmem:[#allocation5 + $0x80] sm:$0xff]  ;;  %v317_v4 = vld [vmem:[#allocation5 + $0x2f8] sm:$0xff] }
  0x6b   : > { %1012 = vmatprep.subr.mxu1 %v276_v37  ;;  %978 = vmatpush3.msra.mxu0 %v228_v38  ;;  %v270_v61 = vld [vmem:[#allocation5 + $0x180] sm:$0xff]  ;;  %v217_v63 = vld [vmem:[%s1443_s6 + $0x8] sm:$0xff]  ;;  %v219_v1 = vld [vmem:[%s1443_s6 + $0x18] sm:$0xff] }
  0x6c   : > { %1013 = vmatpush3.msra.mxu1 %v260_v39  ;;  %979 = vmatprep.subr.mxu0 %v243_v40  ;;  %v222_v62 = vld [vmem:[#allocation5] sm:$0xff]  ;;  %v301_v5 = vld [vmem:[#allocation5 + $0x278] sm:$0xff]  ;;  %v316_v7 = vld [vmem:[#allocation5 + $0x2f0] sm:$0xff] }
  0x6d   : > { %1014 = vmatprep.subr.mxu1 %v275_v41  ;;  %980 = vmatpush3.msra.mxu0 %v227_v42  ;;  %v254_v0 = vld [vmem:[#allocation5 + $0x100] sm:$0xff]  ;;  %v221_v6 = vld [vmem:[%s1443_s6 + $0x28] sm:$0xff]  ;;  %v300_v8 = vld [vmem:[#allocation5 + $0x270] sm:$0xff] }
  0x6e   : > { %1015 = vmatpush3.msra.mxu1 %v259_v43  ;;  %981 = vmatprep.subr.mxu0 %v242_v44  ;;  %v216_v2 = vld [vmem:[%s1443_s6] sm:$0xff]  ;;  %v218_v3 = vld [vmem:[%s1443_s6 + $0x10] sm:$0xff]  ;;  %v315_v9 = vld [vmem:[#allocation5 + $0x2e8] sm:$0xff] }
  0x6f   : > { %1016 = vmatprep.subr.mxu1 %v274_v45  ;;  %982 = vmatpush3.msra.mxu0 %v226_v46  ;;  %v299_v10 = vld [vmem:[#allocation5 + $0x268] sm:$0xff]  ;;  %v314_v11 = vld [vmem:[#allocation5 + $0x2e0] sm:$0xff]  ;;  %v313_v13 = vld [vmem:[#allocation5 + $0x2d8] sm:$0xff] }
  0x70   : > { %1017 = vmatpush3.msra.mxu1 %v258_v47  ;;  %983 = vmatprep.subr.mxu0 %v241_v48  ;;  %v298_v12 = vld [vmem:[#allocation5 + $0x260] sm:$0xff]  ;;  %v297_v14 = vld [vmem:[#allocation5 + $0x258] sm:$0xff]  ;;  %v312_v15 = vld [vmem:[#allocation5 + $0x2d0] sm:$0xff] }
  0x71   : > { %1018 = vmatprep.subr.mxu1 %v273_v49  ;;  %984 = vmatpush3.msra.mxu0 %v225_v50  ;;  %v296_v16 = vld [vmem:[#allocation5 + $0x250] sm:$0xff]  ;;  %v311_v17 = vld [vmem:[#allocation5 + $0x2c8] sm:$0xff]  ;;  %v310_v19 = vld [vmem:[#allocation5 + $0x2c0] sm:$0xff] }
  0x72   : > { %1019 = vmatpush3.msra.mxu1 %v257_v51  ;;  %985 = vmatprep.subr.mxu0 %v240_v52  ;;  %v295_v18 = vld [vmem:[#allocation5 + $0x248] sm:$0xff]  ;;  %v294_v20 = vld [vmem:[#allocation5 + $0x240] sm:$0xff]  ;;  %v309_v21 = vld [vmem:[#allocation5 + $0x2b8] sm:$0xff] }
  0x73   : > { %1020 = vmatprep.subr.mxu1 %v272_v53  ;;  %986 = vmatpush3.msra.mxu0 %v224_v54  ;;  %v293_v22 = vld [vmem:[#allocation5 + $0x238] sm:$0xff]  ;;  %v308_v23 = vld [vmem:[#allocation5 + $0x2b0] sm:$0xff]  ;;  %v307_v25 = vld [vmem:[#allocation5 + $0x2a8] sm:$0xff] }
  0x74   : > { %1021 = vmatpush3.msra.mxu1 %v256_v55  ;;  %987 = vmatprep.subr.mxu0 %v239_v56  ;;  %v292_v24 = vld [vmem:[#allocation5 + $0x230] sm:$0xff]  ;;  %v291_v26 = vld [vmem:[#allocation5 + $0x228] sm:$0xff]  ;;  %v306_v27 = vld [vmem:[#allocation5 + $0x2a0] sm:$0xff] }
  0x75   : > { %1022 = vmatprep.subr.mxu1 %v271_v57  ;;  %988 = vmatpush3.msra.mxu0 %v223_v58  ;;  %v290_v28 = vld [vmem:[#allocation5 + $0x220] sm:$0xff]  ;;  %v305_v29 = vld [vmem:[#allocation5 + $0x298] sm:$0xff]  ;;  %v304_v31 = vld [vmem:[#allocation5 + $0x290] sm:$0xff] }
  0x76   : > { %1023 = vmatpush3.msra.mxu1 %v255_v59  ;;  %989 = vmatprep.subr.mxu0 %v238_v60  ;;  %v289_v30 = vld [vmem:[#allocation5 + $0x218] sm:$0xff]  ;;  %v288_v32 = vld [vmem:[#allocation5 + $0x210] sm:$0xff]  ;;  %v303_v33 = vld [vmem:[#allocation5 + $0x288] sm:$0xff] }
  0x77   : > { %1024 = vmatprep.subr.mxu1 %v270_v61  ;;  %990 = vmatpush3.msra.mxu0 %v222_v62  ;;  %v287_v34 = vld [vmem:[#allocation5 + $0x208] sm:$0xff]  ;;  %v302_v35 = vld [vmem:[#allocation5 + $0x280] sm:$0xff]  ;;  %v619_v38 = vld [vmem:[#allocation7 + $0x2d8] sm:$0xff] }
  0x78   : > { %382 = vmatprep.mubr.f32.mxu0 %v217_v63  ;;  %1025 = vmatpush3.msra.mxu1 %v254_v0  ;;  %v286_v36 = vld [vmem:[#allocation5 + $0x200] sm:$0xff]  ;;  %v618_v39 = vld [vmem:[#allocation7 + $0x2d0] sm:$0xff]  ;;  %v621_v40 = vld [vmem:[#allocation7 + $0x2e8] sm:$0xff] }
  0x79   : > { %452 = vmatprep.mubr.f32.mxu1 %v219_v1  ;;  %383 = vmatmul.mubr.f32.vlgmr.msra.gmra.mxu0 %v216_v2  ;;  %v220_v37 = vld [vmem:[%s1443_s6 + $0x20] sm:$0xff]  ;;  %v613_v41 = vld [vmem:[#allocation7 + $0x2a8] sm:$0xff]  ;;  %v615_v44 = vld [vmem:[#allocation7 + $0x2b8] sm:$0xff] }
  0x7a   : > { %453 = vmatmul.mubr.f32.vlgmr.msra.gmra.mxu1 %v218_v3  ;;  %1029 = vmatprep.subr.mxu0 %v317_v4  ;;  %v620_v42 = vld [vmem:[#allocation7 + $0x2e0] sm:$0xff]  ;;  %v607_v45 = vld [vmem:[#allocation7 + $0x278] sm:$0xff]  ;;  %v614_v46 = vld [vmem:[#allocation7 + $0x2b0] sm:$0xff] }
  0x7b   : > { %522 = vmatprep.mubr.f32.mxu0 %v221_v6  ;;  %1030 = vmatpush3.msra.mxu0 %v301_v5  ;;  %v612_v43 = vld [vmem:[#allocation7 + $0x2a0] sm:$0xff]  ;;  %v606_v47 = vld [vmem:[#allocation7 + $0x270] sm:$0xff]  ;;  %v609_v48 = vld [vmem:[#allocation7 + $0x288] sm:$0xff] }
  0x7c   : > { %1031 = vmatprep.subr.mxu0 %v316_v7  ;;  %624 = vmatprep.subr.mxu1 %v619_v38  ;;  %v601_v49 = vld [vmem:[#allocation7 + $0x248] sm:$0xff]  ;;  %v608_v50 = vld [vmem:[#allocation7 + $0x280] sm:$0xff]  ;;  %v603_v51 = vld [vmem:[#allocation7 + $0x258] sm:$0xff] }
  0x7d   : > { %1032 = vmatpush3.msra.mxu0 %v300_v8  ;;  %625 = vmatpush1.msra.mxu1 %v618_v39  ;;  %v600_v52 = vld [vmem:[#allocation7 + $0x240] sm:$0xff]  ;;  %v602_v53 = vld [vmem:[#allocation7 + $0x250] sm:$0xff]  ;;  %v595_v54 = vld [vmem:[#allocation7 + $0x218] sm:$0xff]  ;;  %v1297_v39 = vmov 0.0  }
  0x7e   : > { %1033 = vmatprep.subr.mxu0 %v315_v9  ;;  %626 = vmatprep.subr.mxu1 %v613_v41  ;;  %v597_v55 = vld [vmem:[#allocation7 + $0x228] sm:$0xff]  ;;  %v594_v56 = vld [vmem:[#allocation7 + $0x210] sm:$0xff]  ;;  %v596_v57 = vld [vmem:[#allocation7 + $0x220] sm:$0xff] }
  0x7f   : > { %1034 = vmatpush3.msra.mxu0 %v299_v10  ;;  %627 = vmatpush1.msra.mxu1 %v612_v43  ;;  %v589_v58 = vld [vmem:[#allocation7 + $0x1e8] sm:$0xff]  ;;  %v591_v59 = vld [vmem:[#allocation7 + $0x1f8] sm:$0xff]  ;;  %v588_v60 = vld [vmem:[#allocation7 + $0x1e0] sm:$0xff] }
  0x80   : > { %1035 = vmatprep.subr.mxu0 %v314_v11  ;;  %628 = vmatprep.subr.mxu1 %v607_v45  ;;  %v590_v61 = vld [vmem:[#allocation7 + $0x1f0] sm:$0xff]  ;;  %v583_v62 = vld [vmem:[#allocation7 + $0x1b8] sm:$0xff]  ;;  %v585_v63 = vld [vmem:[#allocation7 + $0x1c8] sm:$0xff] }
  0x81   : > { %1036 = vmatpush3.msra.mxu0 %v298_v12  ;;  %629 = vmatpush1.msra.mxu1 %v606_v47  ;;  %v582_v0 = vld [vmem:[#allocation7 + $0x1b0] sm:$0xff]  ;;  %v584_v1 = vld [vmem:[#allocation7 + $0x1c0] sm:$0xff]  ;;  %v577_v2 = vld [vmem:[#allocation7 + $0x188] sm:$0xff] }
  0x82   : > { %1037 = vmatprep.subr.mxu0 %v313_v13  ;;  %630 = vmatprep.subr.mxu1 %v601_v49  ;;  %v579_v3 = vld [vmem:[#allocation7 + $0x198] sm:$0xff]  ;;  %v576_v4 = vld [vmem:[#allocation7 + $0x180] sm:$0xff]  ;;  %v578_v5 = vld [vmem:[#allocation7 + $0x190] sm:$0xff] }
  0x83   : > { %1038 = vmatpush3.msra.mxu0 %v297_v14  ;;  %631 = vmatpush1.msra.mxu1 %v600_v52  ;;  %v571_v6 = vld [vmem:[#allocation7 + $0x158] sm:$0xff]  ;;  %v573_v7 = vld [vmem:[#allocation7 + $0x168] sm:$0xff]  ;;  %v570_v8 = vld [vmem:[#allocation7 + $0x150] sm:$0xff] }
  0x84   : > { %1039 = vmatprep.subr.mxu0 %v312_v15  ;;  %632 = vmatprep.subr.mxu1 %v595_v54  ;;  %v572_v9 = vld [vmem:[#allocation7 + $0x160] sm:$0xff]  ;;  %v565_v10 = vld [vmem:[#allocation7 + $0x128] sm:$0xff]  ;;  %v567_v11 = vld [vmem:[#allocation7 + $0x138] sm:$0xff] }
  0x85   : > { %1040 = vmatpush3.msra.mxu0 %v296_v16  ;;  %633 = vmatpush1.msra.mxu1 %v594_v56  ;;  %v564_v12 = vld [vmem:[#allocation7 + $0x120] sm:$0xff]  ;;  %v566_v13 = vld [vmem:[#allocation7 + $0x130] sm:$0xff]  ;;  %v559_v14 = vld [vmem:[#allocation7 + $0xf8] sm:$0xff] }
  0x86   : > { %1041 = vmatprep.subr.mxu0 %v311_v17  ;;  %634 = vmatprep.subr.mxu1 %v589_v58  ;;  %v561_v15 = vld [vmem:[#allocation7 + $0x108] sm:$0xff]  ;;  %v558_v16 = vld [vmem:[#allocation7 + $0xf0] sm:$0xff]  ;;  %v560_v17 = vld [vmem:[#allocation7 + $0x100] sm:$0xff] }
  0x87   : > { %1042 = vmatpush3.msra.mxu0 %v295_v18  ;;  %635 = vmatpush1.msra.mxu1 %v588_v60  ;;  %v553_v18 = vld [vmem:[#allocation7 + $0xc8] sm:$0xff]  ;;  %v623_v38 = vld [vmem:[#allocation7 + $0x2f8] sm:$0xff] }
  0x88   : > { %1043 = vmatprep.subr.mxu0 %v310_v19  ;;  %636 = vmatprep.subr.mxu1 %v583_v62  ;;  %v555_v19 = vld [vmem:[#allocation7 + $0xd8] sm:$0xff]  ;;  %v617_v52 = vld [vmem:[#allocation7 + $0x2c8] sm:$0xff] }
  0x89   : > { %1044 = vmatpush3.msra.mxu0 %v294_v20  ;;  %637 = vmatpush1.msra.mxu1 %v582_v0  ;;  %v552_v20 = vld [vmem:[#allocation7 + $0xc0] sm:$0xff]  ;;  %v611_v54 = vld [vmem:[#allocation7 + $0x298] sm:$0xff]  ;;  %v605_v56 = vld [vmem:[#allocation7 + $0x268] sm:$0xff] }
  0x8a   : > { %1045 = vmatprep.subr.mxu0 %v309_v21  ;;  %638 = vmatprep.subr.mxu1 %v577_v2  ;;  %v554_v21 = vld [vmem:[#allocation7 + $0xd0] sm:$0xff]  ;;  %v599_v58 = vld [vmem:[#allocation7 + $0x238] sm:$0xff]  ;;  %v593_v60 = vld [vmem:[#allocation7 + $0x208] sm:$0xff] }
  0x8b   : > { %1046 = vmatpush3.msra.mxu0 %v293_v22  ;;  %639 = vmatpush1.msra.mxu1 %v576_v4  ;;  %v547_v22 = vld [vmem:[#allocation7 + $0x98] sm:$0xff]  ;;  %v581_v0 = vld [vmem:[#allocation7 + $0x1a8] sm:$0xff] }
  0x8c   : > { %1047 = vmatprep.subr.mxu0 %v308_v23  ;;  %640 = vmatprep.subr.mxu1 %v571_v6  ;;  %v549_v23 = vld [vmem:[#allocation7 + $0xa8] sm:$0xff]  ;;  %v587_v62 = vld [vmem:[#allocation7 + $0x1d8] sm:$0xff] }
  0x8d   : > { %1048 = vmatpush3.msra.mxu0 %v292_v24  ;;  %641 = vmatpush1.msra.mxu1 %v570_v8  ;;  %v546_v24 = vld [vmem:[#allocation7 + $0x90] sm:$0xff]  ;;  %v575_v2 = vld [vmem:[#allocation7 + $0x178] sm:$0xff]  ;;  %v569_v4 = vld [vmem:[#allocation7 + $0x148] sm:$0xff] }
  0x8e   : > { %1049 = vmatprep.subr.mxu0 %v307_v25  ;;  %642 = vmatprep.subr.mxu1 %v565_v10  ;;  %v541_v25 = vld [vmem:[#allocation7 + $0x68] sm:$0xff]  ;;  %v563_v6 = vld [vmem:[#allocation7 + $0x118] sm:$0xff] }
  0x8f   : > { %1050 = vmatpush3.msra.mxu0 %v291_v26  ;;  %643 = vmatpush1.msra.mxu1 %v564_v12  ;;  %v548_v26 = vld [vmem:[#allocation7 + $0xa0] sm:$0xff]  ;;  %v557_v8 = vld [vmem:[#allocation7 + $0xe8] sm:$0xff]  ;;  %v551_v10 = vld [vmem:[#allocation7 + $0xb8] sm:$0xff] }
  0x90   : > { %1051 = vmatprep.subr.mxu0 %v306_v27  ;;  %644 = vmatprep.subr.mxu1 %v559_v14  ;;  %v540_v27 = vld [vmem:[#allocation7 + $0x60] sm:$0xff]  ;;  %v545_v12 = vld [vmem:[#allocation7 + $0x88] sm:$0xff]  ;;  %v539_v14 = vld [vmem:[#allocation7 + $0x58] sm:$0xff] }
  0x91   : > { %1052 = vmatpush3.msra.mxu0 %v290_v28  ;;  %645 = vmatpush1.msra.mxu1 %v558_v16  ;;  %v543_v28 = vld [vmem:[#allocation7 + $0x78] sm:$0xff]  ;;  %v533_v16 = vld [vmem:[#allocation7 + $0x28] sm:$0xff] }
  0x92   : > { %1053 = vmatprep.subr.mxu0 %v305_v29  ;;  %646 = vmatprep.subr.mxu1 %v553_v18  ;;  %v535_v29 = vld [vmem:[#allocation7 + $0x38] sm:$0xff] }
  0x93   : > { %1054 = vmatpush3.msra.mxu0 %v289_v30  ;;  %647 = vmatpush1.msra.mxu1 %v552_v20  ;;  %v542_v30 = vld [vmem:[#allocation7 + $0x70] sm:$0xff] }
  0x94   : > { %1055 = vmatprep.subr.mxu0 %v304_v31  ;;  %648 = vmatprep.subr.mxu1 %v547_v22  ;;  %v534_v31 = vld [vmem:[#allocation7 + $0x30] sm:$0xff] }
  0x95   : > { %1056 = vmatpush3.msra.mxu0 %v288_v32  ;;  %649 = vmatpush1.msra.mxu1 %v546_v24  ;;  %v537_v32 = vld [vmem:[#allocation7 + $0x48] sm:$0xff] }
  0x96   : > { %1057 = vmatprep.subr.mxu0 %v303_v33  ;;  %650 = vmatprep.subr.mxu1 %v541_v25  ;;  %v529_v33 = vld [vmem:[#allocation7 + $0x8] sm:$0xff] }
  0x97   : > { %1058 = vmatpush3.msra.mxu0 %v287_v34  ;;  %651 = vmatpush1.msra.mxu1 %v540_v27  ;;  %v536_v34 = vld [vmem:[#allocation7 + $0x40] sm:$0xff] }
  0x98   : > { %1059 = vmatprep.subr.mxu0 %v302_v35  ;;  %652 = vmatprep.subr.mxu1 %v535_v29  ;;  %v528_v35 = vld [vmem:[#allocation7] sm:$0xff] }
  0x99   : > { %1060 = vmatpush3.msra.mxu0 %v286_v36  ;;  %653 = vmatpush1.msra.mxu1 %v534_v31  ;;  %v531_v36 = vld [vmem:[#allocation7 + $0x18] sm:$0xff] }
  0x9a   : > { %523 = vmatmul.mubr.f32.vlgmr.msra.gmra.mxu0 %v220_v37  ;;  %695 = vmatprep.subr.mxu0 %v621_v40  ;;  %v530_v37 = vld [vmem:[#allocation7 + $0x10] sm:$0xff] }
  0x9b   : > { %696 = vmatpush1.msra.mxu0 %v620_v42  ;;  %654 = vmatprep.subr.mxu1 %v529_v33 }
  0x9c   : > { %697 = vmatprep.subr.mxu0 %v615_v44  ;;  %655 = vmatpush1.msra.mxu1 %v528_v35 }
  0x9d   : > { %698 = vmatpush1.msra.mxu0 %v614_v46  ;;  %688 = vmatprep.mubr.f32.mxu1 %v1297_v39 }
  0x9e   : > { %699 = vmatprep.subr.mxu0 %v609_v48  ;;  %759 = vmatprep.mubr.f32.mxu0 %v1297_v39 }
  0x9f   : > { %700 = vmatpush1.msra.mxu0 %v608_v50  ;;  %766 = vmatprep.subr.mxu1 %v623_v38 }
  0xa0   : > { %701 = vmatprep.subr.mxu0 %v603_v51  ;;  %v622_v51 = vld [vmem:[#allocation7 + $0x2f0] sm:$0xff] }
  0xa1   : > { %702 = vmatpush1.msra.mxu0 %v602_v53  ;;  %v616_v53 = vld [vmem:[#allocation7 + $0x2c0] sm:$0xff] }
  0xa2   : > { %703 = vmatprep.subr.mxu0 %v597_v55  ;;  %v610_v55 = vld [vmem:[#allocation7 + $0x290] sm:$0xff] }
  0xa3   : > { %704 = vmatpush1.msra.mxu0 %v596_v57  ;;  %v604_v57 = vld [vmem:[#allocation7 + $0x260] sm:$0xff] }
  0xa4   : > { %705 = vmatprep.subr.mxu0 %v591_v59  ;;  %v598_v59 = vld [vmem:[#allocation7 + $0x230] sm:$0xff] }
  0xa5   : > { %706 = vmatpush1.msra.mxu0 %v590_v61  ;;  %v592_v61 = vld [vmem:[#allocation7 + $0x200] sm:$0xff] }
  0xa6   : > { %707 = vmatprep.subr.mxu0 %v585_v63  ;;  %v586_v63 = vld [vmem:[#allocation7 + $0x1d0] sm:$0xff] }
  0xa7   : > { %708 = vmatpush1.msra.mxu0 %v584_v1  ;;  %v580_v1 = vld [vmem:[#allocation7 + $0x1a0] sm:$0xff] }
  0xa8   : > { %709 = vmatprep.subr.mxu0 %v579_v3  ;;  %v574_v3 = vld [vmem:[#allocation7 + $0x170] sm:$0xff] }
  0xa9   : > { %710 = vmatpush1.msra.mxu0 %v578_v5  ;;  %v568_v5 = vld [vmem:[#allocation7 + $0x140] sm:$0xff] }
  0xaa   : > { %711 = vmatprep.subr.mxu0 %v573_v7  ;;  %v562_v7 = vld [vmem:[#allocation7 + $0x110] sm:$0xff] }
  0xab   : > { %712 = vmatpush1.msra.mxu0 %v572_v9  ;;  %v556_v9 = vld [vmem:[#allocation7 + $0xe0] sm:$0xff] }
  0xac   : > { %713 = vmatprep.subr.mxu0 %v567_v11  ;;  %v550_v11 = vld [vmem:[#allocation7 + $0xb0] sm:$0xff] }
  0xad   : > { %714 = vmatpush1.msra.mxu0 %v566_v13  ;;  %v544_v13 = vld [vmem:[#allocation7 + $0x80] sm:$0xff] }
  0xae   : > { %715 = vmatprep.subr.mxu0 %v561_v15  ;;  %v538_v15 = vld [vmem:[#allocation7 + $0x50] sm:$0xff] }
  0xaf   : > { %716 = vmatpush1.msra.mxu0 %v560_v17  ;;  %v532_v17 = vld [vmem:[#allocation7 + $0x20] sm:$0xff] }
  0xb0   : > { %717 = vmatprep.subr.mxu0 %v555_v19 }
  0xb1   : > { %718 = vmatpush1.msra.mxu0 %v554_v21 }
  0xb2   : > { %719 = vmatprep.subr.mxu0 %v549_v23 }
  0xb3   : > { %720 = vmatpush1.msra.mxu0 %v548_v26 }
  0xb4   : > { %721 = vmatprep.subr.mxu0 %v543_v28 }
  0xb5   : > { %722 = vmatpush1.msra.mxu0 %v542_v30 }
  0xb6   : > { %723 = vmatprep.subr.mxu0 %v537_v32 }
  0xb7   : > { %724 = vmatpush1.msra.mxu0 %v536_v34 }
  0xb8   : > { %725 = vmatprep.subr.mxu0 %v531_v36 }
  0xb9   : > { %726 = vmatpush1.msra.mxu0 %v530_v37 }
 0x139   : > { %v991_v40 = vpop.f32.mrf.mxu0 }
 0x13a   : > { %v1026_v41 = vpop.f32.mrf.mxu1 }
 0x13b   : > { %v992_v42 = vpop.f32.mrf.mxu0 }
 0x13c   : > { %v1027_v43 = vpop.f32.mrf.mxu1  ;;  %v993_v44 = vadd.f32 %v992_v42, %v991_v40 }
 0x13d   : > { %v1028_v45 = vadd.f32 %v1027_v43, %v1026_v41 }
 0x13f   : > { %v455_v48 = vadd.f32 %v1028_v45, %v993_v44 }
 0x15a   : > { %v1061_v46 = vpop.f32.mrf.mxu0 }
 0x15c   : > { %v1062_v47 = vpop.f32.mrf.mxu0 }
 0x15d   : > { %v1063_v49 = vadd.f32 %v1062_v47, %v1061_v46 }
 0x15f   : > { %v1459_v50 = vadd.f32 %v1063_v49, %v455_v48 }
 0x161   : > { %689 = vmatmul.mubr.f32.vlgmr.msra.gmra.mxu1 %v1459_v50  ;;  %760 = vmatmul.mubr.f32.vlgmr.msra.gmra.mxu0 %v1459_v50 }
 0x162   : > { %767 = vmatpush1.msra.mxu1 %v622_v51  ;;  %830 = vmatprep.mubr.f32.mxu1 %v1297_v39 }
 0x163   : > { %768 = vmatprep.subr.mxu1 %v617_v52 }
 0x164   : > { %769 = vmatpush1.msra.mxu1 %v616_v53 }
 0x165   : > { %770 = vmatprep.subr.mxu1 %v611_v54 }
 0x166   : > { %771 = vmatpush1.msra.mxu1 %v610_v55 }
 0x167   : > { %772 = vmatprep.subr.mxu1 %v605_v56 }
 0x168   : > { %773 = vmatpush1.msra.mxu1 %v604_v57 }
 0x169   : > { %774 = vmatprep.subr.mxu1 %v599_v58 }
 0x16a   : > { %775 = vmatpush1.msra.mxu1 %v598_v59 }
 0x16b   : > { %776 = vmatprep.subr.mxu1 %v593_v60 }
 0x16c   : > { %777 = vmatpush1.msra.mxu1 %v592_v61 }
 0x16d   : > { %778 = vmatprep.subr.mxu1 %v587_v62 }
 0x16e   : > { %779 = vmatpush1.msra.mxu1 %v586_v63 }
 0x16f   : > { %780 = vmatprep.subr.mxu1 %v581_v0 }
 0x170   : > { %781 = vmatpush1.msra.mxu1 %v580_v1 }
 0x171   : > { %782 = vmatprep.subr.mxu1 %v575_v2 }
 0x172   : > { %783 = vmatpush1.msra.mxu1 %v574_v3 }
 0x173   : > { %784 = vmatprep.subr.mxu1 %v569_v4 }
 0x174   : > { %785 = vmatpush1.msra.mxu1 %v568_v5 }
 0x175   : > { %786 = vmatprep.subr.mxu1 %v563_v6 }
 0x176   : > { %787 = vmatpush1.msra.mxu1 %v562_v7 }
 0x177   : > { %788 = vmatprep.subr.mxu1 %v557_v8 }
 0x178   : > { %789 = vmatpush1.msra.mxu1 %v556_v9 }
 0x179   : > { %790 = vmatprep.subr.mxu1 %v551_v10 }
 0x17a   : > { %791 = vmatpush1.msra.mxu1 %v550_v11 }
 0x17b   : > { %792 = vmatprep.subr.mxu1 %v545_v12 }
 0x17c   : > { %793 = vmatpush1.msra.mxu1 %v544_v13 }
 0x17d   : > { %794 = vmatprep.subr.mxu1 %v539_v14 }
 0x17e   : > { %795 = vmatpush1.msra.mxu1 %v538_v15 }
 0x17f   : > { %796 = vmatprep.subr.mxu1 %v533_v16 }
 0x180   : > { %797 = vmatpush1.msra.mxu1 %v532_v17 }
 0x181   : > { %831 = vmatmul.mubr.f32.vlgmr.msra.gmra.mxu1 %v1459_v50 }
 0x221   : > { %v690_v18 = vpop.f32.mrf.mxu1  ;;  %v761_v19 = vpop.f32.mrf.mxu0 }
 0x222   : > { %837 = vst [vmem:[%s215_s18] sm:$0xff] %v690_v18  ;;  %839 = vst [vmem:[%s215_s18 + $0x10] sm:$0xff] %v761_v19 }
 0x223   : > { %v692_v20 = vpop.f32.mrf.mxu1  ;;  %v763_v21 = vpop.f32.mrf.mxu0 }
 0x224   : > { %838 = vst [vmem:[%s215_s18 + $0x8] sm:$0xff] %v692_v20  ;;  %840 = vst [vmem:[%s215_s18 + $0x18] sm:$0xff] %v763_v21 }
 0x241   : > { %v832_v22 = vpop.f32.mrf.mxu1 }
 0x242   : > { %841 = vst [vmem:[%s215_s18 + $0x20] sm:$0xff] %v832_v22 }
 0x243   : > { %v834_v23 = vpop.f32.mrf.mxu1 }
 0x244   : > { %842 = vst [vmem:[%s215_s18 + $0x28] sm:$0xff] %v834_v23 }
 0x245   : > { %1233 = shalt.err (!%p1230_p9)
}
 0x246   : > { %s1234_s23 = scalar_lea.hbm %s1470_s4, 768  ;;  %s1238_s26 = scalar_lea.hbm %s1510_s3, 1536 }
 0x247   : > { %p1235_p13 = scmp.ne.s32.totalorder %s1470_s4, %s1234_s23  ;;  %p1239_p4 = scmp.lt.s32.totalorder %s1470_s4, %s1510_s3 }
 0x248   : > { %p1240_p8 = scmp.lt.s32.totalorder %s1238_s26, %s1234_s23 }
 0x249   : > { %p1236_p5 = pnand %p1235_p13, %p1526_p0 }
 0x24a   : > { %p1241_p7 = por %p1240_p8, %p1239_p4 }
 0x24b   : > { %p1237_p10 = pneg %p1236_p5 }
 0x24d   : > { %p1242_p11 = pnand %p1241_p7, %p1237_p10 }
 0x24f   : > { %1245 = shalt.err (!%p1242_p11)
}
 0x250   : > { %1078 = dma.vmem_to_hbm [thread:$0]  (%p1526_p0), %s859_s25, 768, %s1470_s4, %s844_s7  }
 0x251 PF: > { %s870_s5 = sand.u32 1, %s1276_s12   ;;  %p1527_p1 = scmp.ne.s32.totalorder %s1516_s19, 0 }
 0x252   : > { %p1528_p2 = scmp.ge.s32.totalorder %s1288_s15, 2  ;;  %s871_s6 = scalar_lea.sflag [#allocation4], %s870_s5 }
 0x254   : > { %p1092_p6 = pnand %p1528_p2, %p1527_p1 }
 0x256   : > { %p1093_p12 = pneg %p1092_p6 }
 0x258   : > { %1271 = dma.done.wait (%p1093_p12), %s871_s6, 768  }
 0x259   : > { %1273 = vsyncadd (%p1093_p12), %s871_s6, 4294966528  ;;  %p17_p3 = scmp.ge.s32.totalorder %s1391_s9, 4   ;;  %s1529_s12 = smov %s1280_s13 }
 0x25a   : > { %s1530_s13 = smov %s1284_s14  ;;  %s1531_s14 = smov %s1400_s17 }
 0x25b   : > { %s1532_s15 = smov %s1391_s9  ;;  %19 = sbr.rel (!%p17_p3) target bundleno = 6 (0x6), region = 85 }
 0x260   :  { %876 = vsyncpa [#allocation3], 1 }
 0x261   :  { %878 = vsyncpa [#allocation3 + $0x1], 1 }
 0x262   :  { %879 = vsyncpa [#allocation6], 1 }
 0x263   :  { %880 = vsyncpa [#allocation4], 1 }
 0x264   :  { %882 = vsyncpa [#allocation4 + $0x1], 1 }

</bundles_post_ra>
